<compile_context>
chip_gen: v7x
topology: tpu7x:2x2x1
jax: 0.10.0
libtpu: 0.0.40
codegen_flags: <defaults>
</compile_context>

<pallas_src>
import functools

import jax
import jax.numpy as jnp
from jax.experimental import pallas as pl
from jax.experimental.pallas import tpu as pltpu


def _mean_pooling_kernel(x_ref, m_ref, inv_ref, o_ref, emb_acc, *, seq_len, seq_tile):
    """One grid point (i = batch tile, k = seq tile).

    x_ref   : VMEM [TB, TS, H]   hidden-state tile
    m_ref   : VMEM [TB, TS]      attention-mask tile (2-D, lane-dense)
    inv_ref : VMEM [TB, 1]  f32  1 / clamp(sum_s(mask), 1e-9)  (wrapper-computed)
    o_ref   : VMEM [TB, H]       output (resident across the seq axis)
    emb_acc : VMEM [TB, H]  f32  running masked sum of embeddings
    """
    k = pl.program_id(1)

    @pl.when(k == 0)
    def _init():
        emb_acc[...] = jnp.zeros_like(emb_acc)

    x = x_ref[...].astype(jnp.float32)            # (TB, TS, H)
    m = m_ref[...].astype(jnp.float32)            # (TB, TS)
    contrib = x * m[:, :, None]                   # (TB, TS, H)

    if seq_len % seq_tile != 0:
        # Ragged last seq block: zero out-of-range positions (mandatory since
        # we no longer pad x in the wrapper; also guards against NaN garbage
        # in out-of-bounds reads).
        seq_ids = k * seq_tile + jax.lax.broadcasted_iota(jnp.int32, m.shape, 1)
        valid = (seq_ids < seq_len)[:, :, None]   # (TB, TS, 1)
        contrib = jnp.where(valid, contrib, 0.0)

    emb_acc[...] += jnp.sum(contrib, axis=1)      # (TB, H)

    @pl.when(k == pl.num_programs(1) - 1)
    def _finalize():
        o_ref[...] = (emb_acc[...] * inv_ref[...]).astype(o_ref.dtype)


def mean_pooling(last_hidden_state, attention_mask, *,
                 batch_tile=8, seq_tile=None,
                 x_block_budget_bytes=8 * 1024 * 1024):
    """last_hidden_state: [B, S, H]; attention_mask: [B, S] (any numeric dtype)."""
    x = last_hidden_state
    B, S, H = x.shape
    mask2d = attention_mask.astype(jnp.float32).reshape(B, S)

    # Denominator outside the kernel: reads only B*S elements (~1/H of x traffic).
    denom = jnp.clip(jnp.sum(mask2d, axis=1, keepdims=True), 1e-9, None)  # (B, 1)
    inv_denom = (1.0 / denom).astype(jnp.float32)                         # (B, 1)

    # ---- batch tile (parallel axis): small TB keeps the parallel grid axis
    #      >= 2 whenever B > batch_tile (v7x 2-TC sharding) ----
    if B <= batch_tile:
        TB = B                                       # full dim -> always legal
    else:
        TB = max(8, (int(batch_tile) // 8) * 8)      # mask sublane (8) constraint

    # ---- seq tile (reduction axis), sized against the VMEM budget ----
    itemsize = jnp.dtype(x.dtype).itemsize
    if seq_tile is None:
        req = x_block_budget_bytes // max(1, TB * H * itemsize)
    else:
        req = int(seq_tile)
    if req >= S:
        TS = S                                       # single seq block (full dim)
    else:
        TS = min(S, max(128, (int(req) // 128) * 128))  # mask lane (128) constraint

    nb = pl.cdiv(B, TB)
    ns = pl.cdiv(S, TS)

    # ---- explicit scoped-VMEM limit from the actual (padded) block sizes ----
    def _rup(v, m):
        return ((v + m - 1) // m) * m

    x_blk = TB * _rup(TS, 8) * _rup(H, 128) * itemsize
    m_blk = _rup(TB, 8) * _rup(TS, 128) * 4
    inv_blk = _rup(TB, 8) * 128 * 4
    out_blk = _rup(TB, 8) * _rup(H, 128) * itemsize
    acc_blk = _rup(TB, 8) * _rup(H, 128) * 4
    needed = 2 * (x_blk + m_blk + inv_blk + out_blk) + acc_blk
    vmem_limit = int(min(128 * 1024 * 1024,
                         max(needed + 4 * 1024 * 1024, 16 * 1024 * 1024)))

    kernel = functools.partial(_mean_pooling_kernel, seq_len=S, seq_tile=TS)

    out = pl.pallas_call(
        kernel,
        out_shape=jax.ShapeDtypeStruct((B, H), x.dtype),
        grid_spec=pltpu.PrefetchScalarGridSpec(
            num_scalar_prefetch=0,
            grid=(nb, ns),
            in_specs=[
                pl.BlockSpec((TB, TS, H), lambda i, k: (i, k, 0)),  # hidden states
                pl.BlockSpec((TB, TS), lambda i, k: (i, k)),        # 2-D mask tile
                pl.BlockSpec((TB, 1), lambda i, k: (i, 0)),         # inverse denom
            ],
            out_specs=pl.BlockSpec((TB, H), lambda i, k: (i, 0)),   # resident over k
            scratch_shapes=[
                pltpu.VMEM((TB, H), jnp.float32),                   # f32 accumulator
            ],
        ),
        compiler_params=pltpu.CompilerParams(
            dimension_semantics=("parallel", "arbitrary"),
            vmem_limit_bytes=vmem_limit,
        ),
    )(x, mask2d, inv_denom)

    return out


def _mean_pooling_reference(last_hidden_state, attention_mask):
    m = attention_mask.astype(jnp.float32)[:, :, None]
    s = jnp.sum(last_hidden_state.astype(jnp.float32) * m, axis=1)
    c = jnp.clip(jnp.sum(m, axis=1), 1e-9, None)
    return (s / c).astype(last_hidden_state.dtype)


if __name__ == "__main__":
    key = jax.random.PRNGKey(0)
    k1, k2, k3, k4 = jax.random.split(key, 4)

    # Small case: shapes consistent with the module
    # (last_hidden_state [B, S, H], attention_mask [B, S]).
    B, S, H = 2, 8, 32
    x = jax.random.normal(k1, (B, S, H), dtype=jnp.float32)
    lengths = jnp.array([8, 5], dtype=jnp.int32)
    mask = (jnp.arange(S)[None, :] < lengths[:, None]).astype(jnp.float32)

    out = mean_pooling(x, mask)
    jax.block_until_ready(out)
    ref = _mean_pooling_reference(x, mask)
    assert out.shape == (B, H)
    assert out.dtype == jnp.float32
    assert bool(jnp.allclose(out, ref, atol=1e-5, rtol=1e-5))

    # Larger case: ragged batch (10 % 8 != 0), ragged seq (300 % 128 != 0),
    # multi-step seq accumulation, in-kernel seq masking, and an all-zero mask
    # row exercising the clamp(1e-9) path.
    B2, S2, H2 = 10, 300, 128
    x2 = jax.random.normal(k3, (B2, S2, H2), dtype=jnp.float32)
    mask2 = (jax.random.uniform(k4, (B2, S2)) > 0.3).astype(jnp.float32)
    mask2 = mask2.at[3].set(0.0)

    out2 = mean_pooling(x2, mask2, batch_tile=8, seq_tile=128)
    jax.block_until_ready(out2)
    ref2 = _mean_pooling_reference(x2, mask2)
    assert out2.shape == (B2, H2)
    assert bool(jnp.allclose(out2, ref2, atol=1e-5, rtol=1e-5))

    print("KERNEL_OK")
</pallas_src>

<mosaic_0001>
module attributes {stable_mosaic.version = 11 : i64} {
  func.func @_mean_pooling_kernel(%arg0: i32, %arg1: i32, %arg2: memref<2x8x32xf32, #tpu.memory_space<vmem>>, %arg3: memref<2x8xf32, #tpu.memory_space<vmem>>, %arg4: memref<2x1xf32, #tpu.memory_space<vmem>>, %arg5: memref<2x32xf32, #tpu.memory_space<vmem>>, %arg6: memref<2x32xf32, #tpu.memory_space<vmem>>) attributes {dimension_semantics = [#tpu.dimension_semantics<parallel>, #tpu.dimension_semantics<arbitrary>], iteration_bounds = array<i64: 1, 1>, scalar_prefetch = 0 : i64, scratch_operands = 1 : i64, tpu.core_type = #tpu.core_type<tc>, window_params = [{transform_indices = @transform_0, window_bounds = array<i64: 2, 8, 32>}, {transform_indices = @transform_1, window_bounds = array<i64: 2, 8>}, {transform_indices = @transform_2, window_bounds = array<i64: 2, 1>}, {transform_indices = @transform_3, window_bounds = array<i64: 2, 32>}]} {
    %c0_i32 = arith.constant 0 : i32
    %0 = arith.cmpi eq, %arg1, %c0_i32 : i32
    %1 = arith.extui %0 : i1 to i32
    %c0_i32_0 = arith.constant 0 : i32
    %2 = arith.cmpi ne, %1, %c0_i32_0 : i32
    scf.if %2 {
      %cst_11 = arith.constant 0.000000e+00 : f32
      %15 = vector.broadcast %cst_11 : f32 to vector<2x32xf32>
      %c0_12 = arith.constant 0 : index
      %c0_13 = arith.constant 0 : index
      %16 = vector.load %arg6[%c0_12, %c0_13] : memref<2x32xf32, #tpu.memory_space<vmem>>, vector<2x32xf32>
      tpu.vector_store %arg6[%c0_12, %c0_13], %15 {strides = array<i32>} : memref<2x32xf32, #tpu.memory_space<vmem>>, vector<2x32xf32>,
    } else {
    }
    %c0 = arith.constant 0 : index
    %c0_1 = arith.constant 0 : index
    %c0_2 = arith.constant 0 : index
    %3 = vector.load %arg2[%c0, %c0_1, %c0_2] : memref<2x8x32xf32, #tpu.memory_space<vmem>>, vector<2x8x32xf32>
    %c0_3 = arith.constant 0 : index
    %c0_4 = arith.constant 0 : index
    %4 = vector.load %arg3[%c0_3, %c0_4] : memref<2x8xf32, #tpu.memory_space<vmem>>, vector<2x8xf32>
    %5 = vector.shape_cast %4 : vector<2x8xf32> to vector<2x8x1xf32>
    %6 = vector.broadcast %5 : vector<2x8x1xf32> to vector<2x8x32xf32>
    %7 = arith.mulf %3, %6 : vector<2x8x32xf32>
    %c0_5 = arith.constant 0 : index
    %c0_6 = arith.constant 0 : index
    %8 = vector.load %arg6[%c0_5, %c0_6] : memref<2x32xf32, #tpu.memory_space<vmem>>, vector<2x32xf32>
    %cst = arith.constant dense<0.000000e+00> : vector<2x32xf32>
    %9 = vector.multi_reduction <add>, %7, %cst [1] : vector<2x8x32xf32> to vector<2x32xf32>
    %10 = arith.addf %8, %9 : vector<2x32xf32>
    %c0_7 = arith.constant 0 : index
    %c0_8 = arith.constant 0 : index
    %11 = vector.load %arg6[%c0_7, %c0_8] : memref<2x32xf32, #tpu.memory_space<vmem>>, vector<2x32xf32>
    tpu.vector_store %arg6[%c0_7, %c0_8], %10 {strides = array<i32>} : memref<2x32xf32, #tpu.memory_space<vmem>>, vector<2x32xf32>,
    %c0_i32_9 = arith.constant 0 : i32
    %12 = arith.cmpi eq, %arg1, %c0_i32_9 : i32
    %13 = arith.extui %12 : i1 to i32
    %c0_i32_10 = arith.constant 0 : i32
    %14 = arith.cmpi ne, %13, %c0_i32_10 : i32
    scf.if %14 {
      %c0_11 = arith.constant 0 : index
      %c0_12 = arith.constant 0 : index
      %15 = vector.load %arg6[%c0_11, %c0_12] : memref<2x32xf32, #tpu.memory_space<vmem>>, vector<2x32xf32>
      %c0_13 = arith.constant 0 : index
      %c0_14 = arith.constant 0 : index
      %16 = vector.load %arg4[%c0_13, %c0_14] : memref<2x1xf32, #tpu.memory_space<vmem>>, vector<2x1xf32>
      %17 = vector.broadcast %16 : vector<2x1xf32> to vector<2x32xf32>
      %18 = arith.mulf %15, %17 : vector<2x32xf32>
      %c0_15 = arith.constant 0 : index
      %c0_16 = arith.constant 0 : index
      %19 = vector.load %arg5[%c0_15, %c0_16] : memref<2x32xf32, #tpu.memory_space<vmem>>, vector<2x32xf32>
      tpu.vector_store %arg5[%c0_15, %c0_16], %18 {strides = array<i32>} : memref<2x32xf32, #tpu.memory_space<vmem>>, vector<2x32xf32>,
    } else {
    }
    return
  }
  func.func @transform_0(%arg0: i32, %arg1: i32) -> (i32, i32, i32) {
    %c0_i32 = arith.constant 0 : i32
    %c0_i32_0 = arith.constant 0 : i32
    return %arg0, %arg1, %c0_i32 : i32, i32, i32
  }
  func.func @transform_1(%arg0: i32, %arg1: i32) -> (i32, i32) {
    %c0_i32 = arith.constant 0 : i32
    return %arg0, %arg1 : i32, i32
  }
  func.func @transform_2(%arg0: i32, %arg1: i32) -> (i32, i32) {
    %c0_i32 = arith.constant 0 : i32
    %c0_i32_0 = arith.constant 0 : i32
    return %arg0, %c0_i32 : i32, i32
  }
  func.func @transform_3(%arg0: i32, %arg1: i32) -> (i32, i32) {
    %c0_i32 = arith.constant 0 : i32
    %c0_i32_0 = arith.constant 0 : i32
    return %arg0, %c0_i32 : i32, i32
  }
}

</mosaic_0001>

<bundles_post_ra>
// kernel: tpu_custom_call.1
= control target key start
LH: loop header
LB: loop body
LE: loop exit
PB: predicated region body
PF: predicated region fallthrough
CT: control target
= control target key end

     0   :  { %8 = vsyncpa [#allocation4], 0  ;;  %s220_s0 = inlined_call_operand.hbm [shape: f32[2,8,32], index: 0, kind: input, shape index: {}]   ;;  %s221_s1 = inlined_call_operand.vmem [shape: f32[2,8], index: 1, kind: input, shape index: {}]   ;;  %s222_s2 = inlined_call_operand.vmem [shape: f32[2,1], index: 2, kind: input, shape index: {}]   ;;  %s223_s3 = inlined_call_operand.hbm [shape: f32[2,32], index: 3, kind: output, shape index: {}]  }
   0x1   :  { %9 = vsyncpa [#allocation5], 0  ;;  %s161_s12 = smov [#allocation3]   ;;  %s113_s16 = scalar_lea.hbm %s220_s0, 256 }
   0x2   :  { %s15_s13 = sshll.u32 %s161_s12, 4  ;;  %p114_p0 = scmp.ne.s32.totalorder %s220_s0, %s113_s16  ;;  %s16_s13 = int_to_ptr.vmem [resolvable:$true] %s15_s13 }
   0x3   :  { %p117_p1 = scmp.lt.u32.totalorder %s113_s16, %s220_s0 }
   0x5   :  { %p119_p2 = pnand %p117_p1, %p114_p0 }
   0x7   :  { %122 = shalt.err (!%p119_p2)
}
   0x8   :  { %s123_s21 = scalar_lea.vmem %s16_s13, 256  ;;  %p128_p4 = scmp.lt.s32.totalorder %s16_s13, %s16_s13 }
   0x9   :  { %p124_p3 = scmp.ne.s32.totalorder %s16_s13, %s123_s21  ;;  %p129_p5 = scmp.lt.s32.totalorder %s123_s21, %s123_s21 }
   0xb   :  { %p130_p6 = por %p129_p5, %p128_p4 }
   0xd   :  { %p131_p7 = pnand %p130_p6, %p124_p3 }
   0xf   :  { %134 = shalt.err (!%p131_p7)
}
  0x10   :  { %s162_s22 = smov 128   ;;  %s163_s23 = smov 8  }
  0x11   :  { %21 = dma.hbm_to_vmem [thread:$0]  %s220_s0, 256, %s16_s13, [#allocation4], %s162_s22, %s162_s22, %s163_s23  }
  0x12   :  { %157 = dma.done.wait [#allocation4], 256  }
  0x13   :  { %158 = vsyncadd [#allocation4], 4294967040  ;;  %v38_v0 = vlaneseq  ;;  %v164_v1 = vmov 0   ;;  %v37_v5 = vld [vmem:[%s221_s1] sm:$0x3]  ;;  %vm33_vm0 = vcmask 254976  }
  0x14   :  { %111 = vset.pattern.permute.xlu1 %v164_v1  ;;  %112 = vset.pattern.permute.xlu0 %v164_v1  ;;  %v82_v6 = vld [vmem:[%s222_s2] sm:$0x3]  ;;  %v165_v8 = vmov 0.0   ;;  %v35_v10 = vld [vmem:[#allocation3] sm:$0xff]  ;;  %vm55_vm1 = vcmask 261120   ;;  %v36_v13 = vld [vmem:[#allocation3 + $0x8] sm:$0xff] }
  0x15   :  { %v39_v2 = vshrl.u32 %v38_v0, 7  ;;  %85 = vperm.xlu1 %111, %v82_v6   ;;  %34 = vst.msk [vmem:[#allocation2] sm:$0x3] %vm33_vm0, %v165_v8  ;;  %vm72_vm2 = vcmask 1041409   ;;  %s166_s0 = smov [#allocation6]  }
  0x16   :  { %s96_s1 = sshll.u32 %s166_s0, 4  ;;  %s97_s1 = int_to_ptr.vmem [resolvable:$true] %s96_s1 }
  0x17   :  { %v40_v3 = vsub.s32 0, %v39_v2  ;;  %v47_v4 = vsub.s32 1, %v39_v2  ;;  %s135_s2 = scalar_lea.vmem %s97_s1, 32  ;;  %p140_p9 = scmp.lt.s32.totalorder %s97_s1, %s97_s1 }
  0x18   :  { %p136_p8 = scmp.ne.s32.totalorder %s97_s1, %s135_s2  ;;  %p141_p10 = scmp.lt.s32.totalorder %s135_s2, %s135_s2 }
  0x19   :  { %v41_v7 = vrot.slane %v37_v5, %v40_v3  ;;  %v48_v9 = vrot.slane %v37_v5, %v47_v4 }
  0x1a   :  { %p142_p11 = por %p141_p10, %p140_p9 }
  0x1b   :  { %43 = vbcast.lane.b32.xlu0 %v41_v7, 256 }
  0x1c   :  { %v54_v30 = vld [vmem:[#allocation2] sm:$0x3]  ;;  %p143_p12 = pnand %p142_p11, %p136_p8 }
  0x1f   :  { %50 = vbcast.lane.b32.xlu0 %v48_v9, 256 }
  0x8d   :  { %v44_v11 = vpop.permute.xlu0 %43 }
  0x8e   :  { %v52_v12 = vmul.f32 %v44_v11, %v35_v10 }
  0x90   :  { %v56_v14 = vsel %vm55_vm1, %v52_v12, 0.0 }
  0x91   :  { %v57_v15 = vrot.slane %v56_v14, 4  ;;  %v51_v16 = vpop.permute.xlu0 %50 }
  0x92   :  { %v53_v17 = vmul.f32 %v51_v16, %v36_v13 }
  0x93   :  { %v58_v18 = vadd.f32 %v57_v15, %v56_v14 }
  0x94   :  { %v63_v19 = vsel %vm55_vm1, %v53_v17, 0.0  ;;  %v86_v33 = vpop.permute.xlu1 %85 }
  0x95   :  { %v59_v20 = vrot.slane %v58_v18, 2  ;;  %v64_v21 = vrot.slane %v63_v19, 4 }
  0x97   :  { %v60_v22 = vadd.f32 %v59_v20, %v58_v18  ;;  %v65_v23 = vadd.f32 %v64_v21, %v63_v19 }
  0x99   :  { %v66_v24 = vrot.slane %v65_v23, 2  ;;  %v61_v25 = vrot.slane %v60_v22, 1 }
  0x9b   :  { %v67_v26 = vadd.f32 %v66_v24, %v65_v23  ;;  %v62_v28 = vadd.f32 %v61_v25, %v60_v22 }
  0x9d   :  { %v68_v27 = vrot.slane %v67_v26, 1 }
  0x9f   :  { %v69_v29 = vadd.f32 %v68_v27, %v67_v26 }
  0xa1   :  { %v73_v31 = vsel %vm72_vm2, %v69_v29, %v62_v28 }
  0xa2   :  { %v75_v32 = vadd.f32 %v73_v31, %v54_v30 }
  0xa4   :  { %77 = vst.msk [vmem:[#allocation2] sm:$0x3] %vm33_vm0, %v75_v32 }
  0xab   :  { %v81_v34 = vld [vmem:[#allocation2] sm:$0x3] }
  0xac   :  { %v88_v35 = vmul.f32 %v86_v33, %v81_v34 }
  0xae   :  { %89 = vst.msk [vmem:[#allocation6] sm:$0x3] %vm33_vm0, %v88_v35 }
  0xaf   :  { %146 = shalt.err (!%p143_p12)
}
  0xb0   :  { %s147_s5 = scalar_lea.hbm %s223_s3, 32 }
  0xb1   :  { %p148_p13 = scmp.ne.s32.totalorder %s223_s3, %s147_s5  ;;  %p151_p0 = scmp.lt.u32.totalorder %s147_s5, %s223_s3 }
  0xb3   :  { %p153_p1 = pnand %p151_p0, %p148_p13 }
  0xb5   :  { %156 = shalt.err (!%p153_p1)
}
  0xb6   :  { %99 = dma.vmem_to_hbm [thread:$0]  %s97_s1, 32, %s223_s3, [#allocation5]  }
  0xb7   :  { %159 = dma.done.wait [#allocation5], 32  }
  0xb8   :  { %160 = vsyncadd [#allocation5], 4294967264 }
  0xb9   :  { %103 = vsyncpa [#allocation4], 1 }
  0xba   :  { %104 = vsyncpa [#allocation5], 1 }

</bundles_post_ra>
